<compile_context>
chip_gen: v7x
topology: tpu7x:2x2x1
jax: 0.10.0
libtpu: 0.0.40
codegen_flags: <defaults>
</compile_context>

<pallas_src>
import functools

import jax
import jax.numpy as jnp
from jax.experimental import pallas as pl
from jax.experimental.pallas import tpu as pltpu


def _round_up(v, m):
    return ((v + m - 1) // m) * m


# ----------------------------------------------------------- fused kernel ----
def _make_fused_kernel(n_lin1, n_gnn, n_lin2):
    """Build the fused forward kernel for fixed layer counts."""

    def kernel(*refs):
        # ----- unpack refs (inputs ..., outputs ...) --------------------------
        alpha_ref = refs[0]                       # (1,1) SMEM
        x_ref, A_ref, optA_ref = refs[1], refs[2], refs[3]
        pos = 4
        lin1 = [(refs[pos + 2 * i], refs[pos + 2 * i + 1]) for i in range(n_lin1)]
        pos += 2 * n_lin1
        gnns = [(refs[pos + 2 * i], refs[pos + 2 * i + 1]) for i in range(n_gnn)]
        pos += 2 * n_gnn
        lin2 = [(refs[pos + 2 * i], refs[pos + 2 * i + 1]) for i in range(n_lin2)]
        pos += 2 * n_lin2
        out_ref, pen_ref = refs[pos], refs[pos + 1]

        def lrelu(y):
            return jnp.where(y > 0, y, 0.1 * y)

        # ----- linear_list1: x = leakyrelu(x @ W + b, 0.1) --------------------
        x = x_ref[...]                            # (n, FPAD), stays resident
        for w_ref, b_ref in lin1:
            y = jnp.dot(x, w_ref[...], preferred_element_type=jnp.float32)
            x = lrelu(y + b_ref[...])

        # ----- SGSL ------------------------------------------------------------
        sig = jax.nn.sigmoid(
            jnp.full((1, 1), alpha_ref[0, 0], jnp.float32))          # SMEM scalar

        logits = optA_ref[...]                                       # (n, n)
        z = logits - jnp.max(logits, axis=-1, keepdims=True)
        e = jnp.exp(z)
        rowsum = jnp.sum(e, axis=-1, keepdims=True)
        soft = e * pl.reciprocal(rowsum, approx=True)                # softmax(dim=-1)
        log_soft = z - jnp.log(rowsum)                               # log(softmax), no n^2 log

        # penalty = mean(S(soft)), S(v) = where(v > e^-4, log(v) + 5, e^4 * v)
        thr = jnp.exp(jnp.float32(-4.0))
        big = jnp.exp(jnp.float32(4.0))
        s = jnp.where(soft > thr, log_soft + 5.0, big * soft)
        pen_ref[...] = jnp.mean(s).reshape(1, 1)

        # A_out = (1 - sigmoid(alpha)) * rownorm(A) + sigmoid(alpha) * soft
        # precondition: every row of A has a non-zero sum (torch code has no guard)
        a_mat = A_ref[...]
        inv_asum = pl.reciprocal(jnp.sum(a_mat, axis=-1, keepdims=True), approx=True)
        A_out = (1.0 - sig) * (a_mat * inv_asum) + sig * soft        # (n, n) VMEM-resident

        # ----- GNN stack --------------------------------------------------------
        # TODO(synk): GNNlayer is not defined in the reference source; assuming a
        # GCN-style layer out = A @ (x @ W) + b (leakyrelu applied per Model.forward).
        for w_ref, b_ref in gnns:
            xw = jnp.dot(x, w_ref[...], preferred_element_type=jnp.float32)
            y = jnp.dot(A_out, xw, preferred_element_type=jnp.float32) + b_ref[...]
            x = lrelu(y)

        # ----- linear_list2: no activation --------------------------------------
        for w_ref, b_ref in lin2:
            x = jnp.dot(x, w_ref[...], preferred_element_type=jnp.float32) + b_ref[...]

        out_ref[...] = x                          # one lane-dense (n, FPAD) store

    return kernel


@functools.partial(
    jax.jit,
    static_argnames=("n_lin1", "n_gnn", "n_lin2", "nodesize", "fpad"))
def _fused_forward(alpha, x_pad, A, optA, flat_params, *,
                   n_lin1, n_gnn, n_lin2, nodesize, fpad):
    """Single pallas_call running the entire Model forward pass."""
    kernel = _make_fused_kernel(n_lin1, n_gnn, n_lin2)

    n_inputs = 4 + len(flat_params)
    in_specs = (
        [pl.BlockSpec(memory_space=pltpu.MemorySpace.SMEM)]            # alpha scalar
        + [pl.BlockSpec(memory_space=pltpu.MemorySpace.VMEM)] * (n_inputs - 1)
    )
    out_specs = (
        pl.BlockSpec(memory_space=pltpu.MemorySpace.VMEM),             # x out (lane-dense)
        pl.BlockSpec(memory_space=pltpu.MemorySpace.VMEM),             # penalty (1,1)
    )

    return pl.pallas_call(
        kernel,
        out_shape=(
            jax.ShapeDtypeStruct((nodesize, fpad), jnp.float32),
            jax.ShapeDtypeStruct((1, 1), jnp.float32),
        ),
        in_specs=in_specs,
        out_specs=out_specs,
    )(alpha.reshape(1, 1), x_pad, A, optA, *flat_params)


# ------------------------------------------------------------------ Model ----
class ModelPallas:
    def __init__(self, linear_list1, linear_list2, gnn_list, nodesize, key,
                 dropout=None, invariant=True):
        assert dropout is None, "dropout path not modeled (inference)"
        assert invariant, "only invariant=True (over_multilayer_GNN) path"

        dims = list(linear_list1) + list(gnn_list) + list(linear_list2)
        self.fpad = _round_up(max(dims), 128)     # lane-dense padded feature width
        self.nodesize = nodesize
        self.d_out = linear_list2[-1]

        keys = iter(jax.random.split(key, 64))

        def linear_params(din, dout):
            k1, k2 = jax.random.split(next(keys))
            bound = 1.0 / jnp.sqrt(jnp.float32(din))
            w = jax.random.uniform(k1, (din, dout), jnp.float32, -bound, bound)
            b = jax.random.uniform(k2, (dout,), jnp.float32, -bound, bound)
            # zero-pad to (fpad, fpad)/(1, fpad); padded lanes stay exactly 0
            wp = jnp.zeros((self.fpad, self.fpad), jnp.float32).at[:din, :dout].set(w)
            bp = jnp.zeros((1, self.fpad), jnp.float32).at[:, :dout].set(b)
            return (w, b), (wp, bp)

        def build(sizes):
            raw, pad = [], []
            for i in range(len(sizes) - 1):
                r, p = linear_params(sizes[i], sizes[i + 1])
                raw.append(r)
                pad.append(p)
            return raw, pad

        self.lin1_raw, self.lin1 = build(linear_list1)
        self.gnn_raw, self.gnns = build(gnn_list)
        self.lin2_raw, self.lin2 = build(linear_list2)

        # SGSL params (invariant): optimized_A ~ U[0,1), alpha = zeros(1)
        self.optimized_A = jax.random.uniform(next(keys), (nodesize, nodesize),
                                              jnp.float32)
        self.alpha = jnp.zeros((1,), jnp.float32)

    def __call__(self, x, A, mask=None):
        # mask must be None: the torch invariant+mask branch references an
        # undefined variable and would raise.
        assert mask is None
        n, d_in = x.shape
        x_pad = jnp.zeros((n, self.fpad), jnp.float32).at[:, :d_in].set(
            x.astype(jnp.float32))

        flat_params = []
        for w, b in list(self.lin1) + list(self.gnns) + list(self.lin2):
            flat_params.extend([w, b])

        out_pad, pen = _fused_forward(
            self.alpha, x_pad, A.astype(jnp.float32), self.optimized_A,
            tuple(flat_params),
            n_lin1=len(self.lin1), n_gnn=len(self.gnns), n_lin2=len(self.lin2),
            nodesize=self.nodesize, fpad=self.fpad)
        return out_pad[:, : self.d_out], [pen[0, 0]]


# ------------------------------------------------ pure-JAX reference check ----
def _reference_forward(model, x, A):
    lrelu = lambda v: jnp.where(v > 0, v, 0.1 * v)
    h = x
    for w, b in model.lin1_raw:
        h = lrelu(h @ w + b)
    soft = jax.nn.softmax(model.optimized_A, axis=-1)
    thr = jnp.exp(jnp.float32(-4.0))
    big = jnp.exp(jnp.float32(4.0))
    s = jnp.where(soft > thr, jnp.log(soft) + 5.0, big * soft)
    pen = jnp.mean(s)
    sig = jax.nn.sigmoid(model.alpha[0])
    a_norm = A / jnp.sum(A, axis=-1, keepdims=True)
    A_out = (1.0 - sig) * a_norm + sig * soft
    for w, b in model.gnn_raw:
        h = lrelu(A_out @ (h @ w) + b)
    for w, b in model.lin2_raw:
        h = h @ w + b
    return h, pen


# ------------------------------------------------------------------- main ----
if __name__ == "__main__":
    key = jax.random.PRNGKey(0)
    k_param, k_x, k_A = jax.random.split(key, 3)

    nodesize = 16
    linear_list1 = [8, 16]
    gnn_list = [16, 16]
    linear_list2 = [16, 4]

    model = ModelPallas(linear_list1, linear_list2, gnn_list, nodesize, k_param,
                        dropout=None, invariant=True)

    x = jax.random.normal(k_x, (nodesize, linear_list1[0]), jnp.float32)
    # strictly positive adjacency so row-normalisation is well defined
    A = jax.random.uniform(k_A, (nodesize, nodesize), jnp.float32) + 0.1

    out, penalty_term = model(x, A)
    jax.block_until_ready(out)
    jax.block_until_ready(penalty_term[0])
    assert out.shape == (nodesize, linear_list2[-1])

    # correctness vs pure-JAX reference (approx reciprocal -> loose tolerance)
    out_ref, pen_ref = _reference_forward(model, x, A)
    assert jnp.allclose(out, out_ref, rtol=5e-2, atol=1e-3), "output mismatch"
    assert jnp.allclose(penalty_term[0], pen_ref, rtol=5e-2, atol=1e-3), "penalty mismatch"

    print("KERNEL_OK")
</pallas_src>

<mosaic_0001>
module attributes {stable_mosaic.version = 11 : i64} {
  func.func @kernel(%arg0: memref<1x1xf32, #tpu.memory_space<smem>>, %arg1: memref<16x128xf32, #tpu.memory_space<vmem>>, %arg2: memref<16x16xf32, #tpu.memory_space<vmem>>, %arg3: memref<16x16xf32, #tpu.memory_space<vmem>>, %arg4: memref<128x128xf32, #tpu.memory_space<vmem>>, %arg5: memref<1x128xf32, #tpu.memory_space<vmem>>, %arg6: memref<128x128xf32, #tpu.memory_space<vmem>>, %arg7: memref<1x128xf32, #tpu.memory_space<vmem>>, %arg8: memref<128x128xf32, #tpu.memory_space<vmem>>, %arg9: memref<1x128xf32, #tpu.memory_space<vmem>>, %arg10: memref<16x128xf32, #tpu.memory_space<vmem>>, %arg11: memref<1x1xf32, #tpu.memory_space<vmem>>) attributes {dimension_semantics = [], scalar_prefetch = 0 : i64, scratch_operands = 0 : i64, tpu.core_type = #tpu.core_type<tc>} {
    %c0 = arith.constant 0 : index
    %c0_0 = arith.constant 0 : index
    %0 = vector.load %arg1[%c0, %c0_0] : memref<16x128xf32, #tpu.memory_space<vmem>>, vector<16x128xf32>
    %c0_1 = arith.constant 0 : index
    %c0_2 = arith.constant 0 : index
    %1 = vector.load %arg4[%c0_1, %c0_2] : memref<128x128xf32, #tpu.memory_space<vmem>>, vector<128x128xf32>
    %cst = arith.constant dense<0.000000e+00> : vector<16x128xf32>
    %2 = tpu.matmul %0, %1, %cst {dimension_numbers = #tpu.dot_dimension_numbers<[1], [0], [0], [1], [0, 0, 1, 1], [], []>} : vector<16x128xf32>, vector<128x128xf32>, vector<16x128xf32> -> vector<16x128xf32>
    %c0_3 = arith.constant 0 : index
    %c0_4 = arith.constant 0 : index
    %3 = vector.load %arg5[%c0_3, %c0_4] : memref<1x128xf32, #tpu.memory_space<vmem>>, vector<1x128xf32>
    %4 = vector.broadcast %3 : vector<1x128xf32> to vector<16x128xf32>
    %5 = arith.addf %2, %4 : vector<16x128xf32>
    %cst_5 = arith.constant 0.000000e+00 : f32
    %6 = vector.broadcast %cst_5 : f32 to vector<16x128xf32>
    %7 = arith.cmpf ogt, %5, %6 : vector<16x128xf32>
    %cst_6 = arith.constant 1.000000e-01 : f32
    %8 = vector.broadcast %cst_6 : f32 to vector<16x128xf32>
    %9 = arith.mulf %8, %5 : vector<16x128xf32>
    %10 = arith.select %7, %5, %9 : vector<16x128xi1>, vector<16x128xf32>
    %c0_7 = arith.constant 0 : index
    %c0_8 = arith.constant 0 : index
    %11 = memref.load %arg0[%c0_7, %c0_8] : memref<1x1xf32, #tpu.memory_space<smem>>
    %12 = vector.broadcast %11 : f32 to vector<1x1xf32>
    %13 = arith.negf %12 : vector<1x1xf32>
    %14 = math.exp %13 : vector<1x1xf32>
    %cst_9 = arith.constant 1.000000e+00 : f32
    %15 = vector.broadcast %cst_9 : f32 to vector<1x1xf32>
    %16 = arith.addf %15, %14 : vector<1x1xf32>
    %17 = arith.divf %15, %16 : vector<1x1xf32>
    %c0_10 = arith.constant 0 : index
    %c0_11 = arith.constant 0 : index
    %18 = vector.load %arg3[%c0_10, %c0_11] : memref<16x16xf32, #tpu.memory_space<vmem>>, vector<16x16xf32>
    %cst_12 = arith.constant dense<0xFF800000> : vector<16xf32>
    %19 = vector.multi_reduction <maximumf>, %18, %cst_12 [1] : vector<16x16xf32> to vector<16xf32>
    %20 = vector.shape_cast %19 : vector<16xf32> to vector<16x1xf32>
    %21 = vector.broadcast %20 : vector<16x1xf32> to vector<16x16xf32>
    %22 = arith.subf %18, %21 : vector<16x16xf32>
    %23 = math.exp %22 : vector<16x16xf32>
    %cst_13 = arith.constant dense<0.000000e+00> : vector<16xf32>
    %24 = vector.multi_reduction <add>, %23, %cst_13 [1] : vector<16x16xf32> to vector<16xf32>
    %25 = vector.shape_cast %24 : vector<16xf32> to vector<16x1xf32>
    %26 = tpu.reciprocal %25 {approx = true} : vector<16x1xf32> -> vector<16x1xf32>
    %27 = vector.broadcast %26 : vector<16x1xf32> to vector<16x16xf32>
    %28 = arith.mulf %23, %27 : vector<16x16xf32>
    %29 = math.log %25 : vector<16x1xf32>
    %30 = vector.broadcast %29 : vector<16x1xf32> to vector<16x16xf32>
    %31 = arith.subf %22, %30 : vector<16x16xf32>
    %cst_14 = arith.constant -4.000000e+00 : f32
    %32 = math.exp %cst_14 : f32
    %cst_15 = arith.constant 4.000000e+00 : f32
    %33 = math.exp %cst_15 : f32
    %34 = vector.broadcast %32 : f32 to vector<16x16xf32>
    %35 = arith.cmpf ogt, %28, %34 : vector<16x16xf32>
    %cst_16 = arith.constant 5.000000e+00 : f32
    %36 = vector.broadcast %cst_16 : f32 to vector<16x16xf32>
    %37 = arith.addf %31, %36 : vector<16x16xf32>
    %38 = vector.broadcast %33 : f32 to vector<16x16xf32>
    %39 = arith.mulf %38, %28 : vector<16x16xf32>
    %40 = arith.select %35, %37, %39 : vector<16x16xi1>, vector<16x16xf32>
    %41 = vector.shape_cast %40 : vector<16x16xf32> to vector<1x16x16xf32>
    %cst_17 = arith.constant dense<0.000000e+00> : vector<1xf32>
    %42 = vector.multi_reduction <add>, %41, %cst_17 [1, 2] : vector<1x16x16xf32> to vector<1xf32>
    %43 = vector.shape_cast %42 : vector<1xf32> to vector<1x1x1xf32>
    %44 = vector.extract %43[0, 0, 0] : f32 from vector<1x1x1xf32>
    %cst_18 = arith.constant 2.560000e+02 : f32
    %45 = arith.divf %44, %cst_18 : f32
    %46 = vector.broadcast %45 : f32 to vector<1x1xf32>
    %c0_19 = arith.constant 0 : index
    %c0_20 = arith.constant 0 : index
    %47 = vector.load %arg11[%c0_19, %c0_20] : memref<1x1xf32, #tpu.memory_space<vmem>>, vector<1x1xf32>
    tpu.vector_store %arg11[%c0_19, %c0_20], %46 {strides = array<i32>} : memref<1x1xf32, #tpu.memory_space<vmem>>, vector<1x1xf32>,
    %c0_21 = arith.constant 0 : index
    %c0_22 = arith.constant 0 : index
    %48 = vector.load %arg2[%c0_21, %c0_22] : memref<16x16xf32, #tpu.memory_space<vmem>>, vector<16x16xf32>
    %cst_23 = arith.constant dense<0.000000e+00> : vector<16xf32>
    %49 = vector.multi_reduction <add>, %48, %cst_23 [1] : vector<16x16xf32> to vector<16xf32>
    %50 = vector.shape_cast %49 : vector<16xf32> to vector<16x1xf32>
    %51 = tpu.reciprocal %50 {approx = true} : vector<16x1xf32> -> vector<16x1xf32>
    %cst_24 = arith.constant 1.000000e+00 : f32
    %52 = vector.broadcast %cst_24 : f32 to vector<1x1xf32>
    %53 = arith.subf %52, %17 : vector<1x1xf32>
    %54 = vector.broadcast %51 : vector<16x1xf32> to vector<16x16xf32>
    %55 = arith.mulf %48, %54 : vector<16x16xf32>
    %56 = vector.broadcast %53 : vector<1x1xf32> to vector<16x16xf32>
    %57 = arith.mulf %56, %55 : vector<16x16xf32>
    %58 = vector.broadcast %17 : vector<1x1xf32> to vector<16x16xf32>
    %59 = arith.mulf %58, %28 : vector<16x16xf32>
    %60 = arith.addf %57, %59 : vector<16x16xf32>
    %c0_25 = arith.constant 0 : index
    %c0_26 = arith.constant 0 : index
    %61 = vector.load %arg6[%c0_25, %c0_26] : memref<128x128xf32, #tpu.memory_space<vmem>>, vector<128x128xf32>
    %cst_27 = arith.constant dense<0.000000e+00> : vector<16x128xf32>
    %62 = tpu.matmul %10, %61, %cst_27 {dimension_numbers = #tpu.dot_dimension_numbers<[1], [0], [0], [1], [0, 0, 1, 1], [], []>} : vector<16x128xf32>, vector<128x128xf32>, vector<16x128xf32> -> vector<16x128xf32>
    %cst_28 = arith.constant dense<0.000000e+00> : vector<16x128xf32>
    %63 = tpu.matmul %60, %62, %cst_28 {dimension_numbers = #tpu.dot_dimension_numbers<[1], [0], [0], [1], [0, 0, 1, 1], [], []>} : vector<16x16xf32>, vector<16x128xf32>, vector<16x128xf32> -> vector<16x128xf32>
    %c0_29 = arith.constant 0 : index
    %c0_30 = arith.constant 0 : index
    %64 = vector.load %arg7[%c0_29, %c0_30] : memref<1x128xf32, #tpu.memory_space<vmem>>, vector<1x128xf32>
    %65 = vector.broadcast %64 : vector<1x128xf32> to vector<16x128xf32>
    %66 = arith.addf %63, %65 : vector<16x128xf32>
    %cst_31 = arith.constant 0.000000e+00 : f32
    %67 = vector.broadcast %cst_31 : f32 to vector<16x128xf32>
    %68 = arith.cmpf ogt, %66, %67 : vector<16x128xf32>
    %cst_32 = arith.constant 1.000000e-01 : f32
    %69 = vector.broadcast %cst_32 : f32 to vector<16x128xf32>
    %70 = arith.mulf %69, %66 : vector<16x128xf32>
    %71 = arith.select %68, %66, %70 : vector<16x128xi1>, vector<16x128xf32>
    %c0_33 = arith.constant 0 : index
    %c0_34 = arith.constant 0 : index
    %72 = vector.load %arg8[%c0_33, %c0_34] : memref<128x128xf32, #tpu.memory_space<vmem>>, vector<128x128xf32>
    %cst_35 = arith.constant dense<0.000000e+00> : vector<16x128xf32>
    %73 = tpu.matmul %71, %72, %cst_35 {dimension_numbers = #tpu.dot_dimension_numbers<[1], [0], [0], [1], [0, 0, 1, 1], [], []>} : vector<16x128xf32>, vector<128x128xf32>, vector<16x128xf32> -> vector<16x128xf32>
    %c0_36 = arith.constant 0 : index
    %c0_37 = arith.constant 0 : index
    %74 = vector.load %arg9[%c0_36, %c0_37] : memref<1x128xf32, #tpu.memory_space<vmem>>, vector<1x128xf32>
    %75 = vector.broadcast %74 : vector<1x128xf32> to vector<16x128xf32>
    %76 = arith.addf %73, %75 : vector<16x128xf32>
    %c0_38 = arith.constant 0 : index
    %c0_39 = arith.constant 0 : index
    %77 = vector.load %arg10[%c0_38, %c0_39] : memref<16x128xf32, #tpu.memory_space<vmem>>, vector<16x128xf32>
    tpu.vector_store %arg10[%c0_38, %c0_39], %76 {strides = array<i32>} : memref<16x128xf32, #tpu.memory_space<vmem>>, vector<16x128xf32>,
    return
  }
}

</mosaic_0001>

<bundles_post_ra>
// kernel: _fused_forward.1
= control target key start
LH: loop header
LB: loop body
LE: loop exit
PB: predicated region body
PF: predicated region fallthrough
CT: control target
= control target key end

     0   :  { %18 = vsyncpa [#allocation4], 0  ;;  %s1382_s0 = inlined_call_operand.<no memory space> [shape: f32[1,1], index: 0, kind: input, shape index: {}]   ;;  %s1383_s1 = inlined_call_operand.hbm [shape: f32[16,128], index: 1, kind: input, shape index: {}]   ;;  %s1384_s2 = inlined_call_operand.hbm [shape: f32[16,16], index: 2, kind: input, shape index: {}]   ;;  %s1385_s3 = inlined_call_operand.hbm [shape: f32[16,16], index: 3, kind: input, shape index: {}]   ;;  %s1386_s4 = inlined_call_operand.hbm [shape: f32[128,128], index: 4, kind: input, shape index: {}]   ;;  %s1387_s5 = inlined_call_operand.vmem [shape: f32[1,128], index: 5, kind: input, shape index: {}]   ;;  %s1388_s6 = inlined_call_operand.hbm [shape: f32[128,128], index: 6, kind: input, shape index: {}]   ;;  %s1389_s7 = inlined_call_operand.vmem [shape: f32[1,128], index: 7, kind: input, shape index: {}]   ;;  %s1390_s8 = inlined_call_operand.hbm [shape: f32[128,128], index: 8, kind: input, shape index: {}]   ;;  %s1391_s9 = inlined_call_operand.vmem [shape: f32[1,128], index: 9, kind: input, shape index: {}]   ;;  %s1392_s10 = inlined_call_operand.hbm [shape: f32[16,128], index: 10, kind: output, shape index: {0}]   ;;  %s1393_s11 = inlined_call_operand.hbm [shape: f32[1,1], index: 11, kind: output, shape index: {1}]  }
   0x1   :  { %19 = vsyncpa [#allocation7], 0 }
   0x2   :  { %20 = vsyncpa [#allocation10], 0 }
   0x3   :  { %21 = vsyncpa [#allocation13], 0 }
   0x4   :  { %22 = vsyncpa [#allocation5], 0 }
   0x5   :  { %23 = vsyncpa [#allocation16], 0  ;;  %s1127_s17 = smov [#allocation6]   ;;  %s1128_s19 = smov [#allocation9]  }
   0x6   :  { %s43_s18 = sshll.u32 %s1127_s17, 4  ;;  %s67_s20 = sshll.u32 %s1128_s19, 4  ;;  %s44_s18 = int_to_ptr.vmem [resolvable:$true] %s43_s18  ;;  %s1197_s20 = int_to_ptr.vmem [resolvable:$true] %s67_s20 }
   0x7   :  { %s939_s23 = scalar_lea.hbm %s1384_s2, 256 }
   0x8   :  { %p940_p0 = scmp.ne.s32.totalorder %s1384_s2, %s939_s23  ;;  %p943_p1 = scmp.lt.u32.totalorder %s939_s23, %s1384_s2 }
   0xa   :  { %p945_p2 = pnand %p943_p1, %p940_p0 }
   0xc   :  { %948 = shalt.err (!%p945_p2)
}
   0xd   :  { %s949_s28 = scalar_lea.vmem %s44_s18, 256  ;;  %p954_p4 = scmp.lt.s32.totalorder %s44_s18, %s44_s18 }
   0xe   :  { %p950_p3 = scmp.ne.s32.totalorder %s44_s18, %s949_s28  ;;  %p955_p5 = scmp.lt.s32.totalorder %s949_s28, %s949_s28 }
  0x10   :  { %p956_p6 = por %p955_p5, %p954_p4 }
  0x12   :  { %p957_p7 = pnand %p956_p6, %p950_p3 }
  0x14   :  { %960 = shalt.err (!%p957_p7)
}
  0x15   :  { %s1129_s29 = smov 128   ;;  %s1130_s30 = smov 8  }
  0x16   :  { %49 = dma.hbm_to_vmem [thread:$0]  %s1384_s2, 256, %s44_s18, [#allocation7], %s1129_s29, %s1129_s29, %s1130_s30  }
  0x17   :  { %s961_s16 = scalar_lea.hbm %s1386_s4, 2048 }
  0x18   :  { %p962_p8 = scmp.ne.s32.totalorder %s1386_s4, %s961_s16  ;;  %p965_p9 = scmp.lt.u32.totalorder %s961_s16, %s1386_s4 }
  0x1a   :  { %p967_p10 = pnand %p965_p9, %p962_p8 }
  0x1c   :  { %970 = shalt.err (!%p967_p10)
}
  0x1d   :  { %s971_s23 = scalar_lea.vmem %s1197_s20, 2048  ;;  %p976_p12 = scmp.lt.s32.totalorder %s1197_s20, %s1197_s20 }
  0x1e   :  { %p972_p11 = scmp.ne.s32.totalorder %s1197_s20, %s971_s23  ;;  %p977_p13 = scmp.lt.s32.totalorder %s971_s23, %s971_s23 }
  0x20   :  { %p978_p0 = por %p977_p13, %p976_p12 }
  0x22   :  { %p979_p1 = pnand %p978_p0, %p972_p11 }
  0x24   :  { %982 = shalt.err (!%p979_p1)
}
  0x25   :  { %73 = dma.hbm_to_vmem [thread:$0]  %s1386_s4, 2048, %s1197_s20, [#allocation10], %s1129_s29, %s1129_s29, %s1130_s30  }
  0x26   :  { %s1131_s24 = smov [#allocation3]   ;;  %s1132_s26 = smov [#allocation8]  }
  0x27   :  { %s31_s25 = sshll.u32 %s1131_s24, 4  ;;  %s55_s27 = sshll.u32 %s1132_s26, 4  ;;  %s32_s25 = int_to_ptr.vmem [resolvable:$true] %s31_s25  ;;  %s1234_s27 = int_to_ptr.vmem [resolvable:$true] %s55_s27 }
  0x28   :  { %s983_s13 = scalar_lea.hbm %s1383_s1, 256 }
  0x29   :  { %p984_p2 = scmp.ne.s32.totalorder %s1383_s1, %s983_s13  ;;  %p987_p3 = scmp.lt.u32.totalorder %s983_s13, %s1383_s1 }
  0x2b   :  { %p989_p4 = pnand %p987_p3, %p984_p2 }
  0x2d   :  { %992 = shalt.err (!%p989_p4)
}
  0x2e   :  { %s993_s4 = scalar_lea.vmem %s32_s25, 256  ;;  %p998_p6 = scmp.lt.s32.totalorder %s32_s25, %s32_s25 }
  0x2f   :  { %p994_p5 = scmp.ne.s32.totalorder %s32_s25, %s993_s4  ;;  %p999_p7 = scmp.lt.s32.totalorder %s993_s4, %s993_s4 }
  0x31   :  { %p1000_p8 = por %p999_p7, %p998_p6 }
  0x33   :  { %p1001_p9 = pnand %p1000_p8, %p994_p5 }
  0x35   :  { %1004 = shalt.err (!%p1001_p9)
}
  0x36   :  { %37 = dma.hbm_to_vmem [thread:$0]  %s1383_s1, 256, %s32_s25, [#allocation4], %s1129_s29, %s1129_s29, %s1130_s30  }
  0x37   :  { %s1005_s23 = scalar_lea.hbm %s1385_s3, 256 }
  0x38   :  { %p1006_p10 = scmp.ne.s32.totalorder %s1385_s3, %s1005_s23  ;;  %p1009_p11 = scmp.lt.u32.totalorder %s1005_s23, %s1385_s3 }
  0x3a   :  { %p1011_p12 = pnand %p1009_p11, %p1006_p10 }
  0x3c   :  { %1014 = shalt.err (!%p1011_p12)
}
  0x3d   :  { %s1015_s28 = scalar_lea.vmem %s1234_s27, 256  ;;  %p1020_p0 = scmp.lt.s32.totalorder %s1234_s27, %s1234_s27 }
  0x3e   :  { %p1016_p13 = scmp.ne.s32.totalorder %s1234_s27, %s1015_s28  ;;  %p1021_p1 = scmp.lt.s32.totalorder %s1015_s28, %s1015_s28 }
  0x40   :  { %p1022_p2 = por %p1021_p1, %p1020_p0 }
  0x42   :  { %p1023_p3 = pnand %p1022_p2, %p1016_p13 }
  0x44   :  { %1026 = shalt.err (!%p1023_p3)
}
  0x45   :  { %61 = dma.hbm_to_vmem [thread:$0]  %s1385_s3, 256, %s1234_s27, [#allocation7], %s1129_s29, %s1129_s29, %s1130_s30  }
  0x46   :  { %s1133_s12 = smov [#allocation11]   ;;  %s1134_s14 = smov [#allocation12]  }
  0x47   :  { %s81_s13 = sshll.u32 %s1133_s12, 4  ;;  %s95_s15 = sshll.u32 %s1134_s14, 4  ;;  %s82_s13 = int_to_ptr.vmem [resolvable:$true] %s81_s13  ;;  %s1271_s15 = int_to_ptr.vmem [resolvable:$true] %s95_s15 }
  0x48   :  { %s1027_s4 = scalar_lea.hbm %s1388_s6, 2048 }
  0x49   :  { %p1028_p4 = scmp.ne.s32.totalorder %s1388_s6, %s1027_s4  ;;  %p1031_p5 = scmp.lt.u32.totalorder %s1027_s4, %s1388_s6 }
  0x4b   :  { %p1033_p6 = pnand %p1031_p5, %p1028_p4 }
  0x4d   :  { %1036 = shalt.err (!%p1033_p6)
}
  0x4e   :  { %s1037_s3 = scalar_lea.vmem %s82_s13, 2048  ;;  %p1042_p8 = scmp.lt.s32.totalorder %s82_s13, %s82_s13 }
  0x4f   :  { %p1038_p7 = scmp.ne.s32.totalorder %s82_s13, %s1037_s3  ;;  %p1043_p9 = scmp.lt.s32.totalorder %s1037_s3, %s1037_s3 }
  0x51   :  { %p1044_p10 = por %p1043_p9, %p1042_p8 }
  0x53   :  { %p1045_p11 = pnand %p1044_p10, %p1038_p7 }
  0x55   :  { %1048 = shalt.err (!%p1045_p11)
}
  0x56   :  { %87 = dma.hbm_to_vmem [thread:$0]  %s1388_s6, 2048, %s82_s13, [#allocation10], %s1129_s29, %s1129_s29, %s1130_s30  }
  0x57   :  { %s1049_s24 = scalar_lea.hbm %s1390_s8, 2048 }
  0x58   :  { %p1050_p12 = scmp.ne.s32.totalorder %s1390_s8, %s1049_s24  ;;  %p1053_p13 = scmp.lt.u32.totalorder %s1049_s24, %s1390_s8 }
  0x5a   :  { %p1055_p0 = pnand %p1053_p13, %p1050_p12 }
  0x5c   :  { %1058 = shalt.err (!%p1055_p0)
}
  0x5d   :  { %s1059_s12 = scalar_lea.vmem %s1271_s15, 2048  ;;  %p1064_p2 = scmp.lt.s32.totalorder %s1271_s15, %s1271_s15 }
  0x5e   :  { %p1060_p1 = scmp.ne.s32.totalorder %s1271_s15, %s1059_s12  ;;  %p1065_p3 = scmp.lt.s32.totalorder %s1059_s12, %s1059_s12 }
  0x60   :  { %p1066_p4 = por %p1065_p3, %p1064_p2 }
  0x62   :  { %p1067_p5 = pnand %p1066_p4, %p1060_p1 }
  0x64   :  { %1070 = shalt.err (!%p1067_p5)
}
  0x65   :  { %101 = dma.hbm_to_vmem [thread:$0]  %s1390_s8, 2048, %s1271_s15, [#allocation13], %s1129_s29, %s1129_s29, %s1130_s30  }
  0x66   :  { %1115 = dma.done.wait [#allocation4], 256  }
  0x67   :  { %1116 = vsyncadd [#allocation4], 4294967040 }
  0x68   :  { %1117 = dma.done.wait [#allocation7], 512  }
  0x69   :  { %1118 = vsyncadd [#allocation7], 4294966784 }
  0x6a   :  { %1119 = dma.done.wait [#allocation10], 4096  }
  0x6b   :  { %1120 = vsyncadd [#allocation10], 4294963200 }
  0x6c   :  { %1121 = dma.done.wait [#allocation13], 2048  }
  0x6d   :  { %1122 = vsyncadd [#allocation13], 4294965248  ;;  %vm238_vm0 = vcmask 130048   ;;  %v1308_v0 = vld [vmem:[#allocation8] sm:$0xff]  ;;  %v124_v1 = vld [vmem:[#allocation9] sm:$0xff]  ;;  %vm291_vm5 = vcmask 0  }
  0x6e   :  { %v125_v2 = vld [vmem:[#allocation9 + $0x8] sm:$0xff]  ;;  %v239_v3 = vsel %vm238_vm0, %v1308_v0, -inf  ;;  %v1312_v5 = vld [vmem:[#allocation8 + $0x8] sm:$0xff]  ;;  %v126_v6 = vld [vmem:[#allocation9 + $0x10] sm:$0xff]  ;;  %s1135_s20 = smov [#allocation15]  }
  0x6f   :  { %v807_v4 = vpack.c.bf16 %v125_v2, %v124_v1  ;;  %v127_v7 = vld [vmem:[#allocation9 + $0x18] sm:$0xff]  ;;  %240 = vmax.xlane.f32.xlu0 %v239_v3  ;;  %v128_v9 = vld [vmem:[#allocation9 + $0x20] sm:$0xff]  ;;  %v129_v10 = vld [vmem:[#allocation9 + $0x28] sm:$0xff]  ;;  %v242_v11 = vsel %vm238_vm0, %v1312_v5, -inf  ;;  %s615_s19 = sshll.u32 %s1135_s20, 4  ;;  %s616_s19 = int_to_ptr.vmem [resolvable:$true] %s615_s19 }
  0x70   :  { %v811_v8 = vpack.c.bf16 %v127_v7, %v126_v6  ;;  %v815_v12 = vpack.c.bf16 %v129_v10, %v128_v9  ;;  %v130_v13 = vld [vmem:[#allocation9 + $0x30] sm:$0xff]  ;;  %v131_v14 = vld [vmem:[#allocation9 + $0x38] sm:$0xff]  ;;  %v132_v17 = vld [vmem:[#allocation9 + $0x40] sm:$0xff]  ;;  %s1071_s21 = scalar_lea.vmem %s616_s19, 16  ;;  %s1075_s22 = scalar_lea.vmem %s616_s19, 32 }
  0x71   :  { %808 = vmatprep.subr.bf16.mxu0 %v807_v4  ;;  %v122_v15 = vld [vmem:[#allocation3] sm:$0xff]  ;;  %v819_v16 = vpack.c.bf16 %v131_v14, %v130_v13  ;;  %v133_v18 = vld [vmem:[#allocation9 + $0x48] sm:$0xff]  ;;  %v135_v21 = vld [vmem:[#allocation9 + $0x58] sm:$0xff]  ;;  %v229_v13 = vstv %s1382_s0  ;;  %p1072_p6 = scmp.ne.s32.totalorder %s616_s19, %s1071_s21  ;;  %p1076_p7 = scmp.lt.s32.totalorder %s616_s19, %s616_s19 }
  0x72   :  { %810 = vmatpush3.bf16.msra.mxu0 %v807_v4  ;;  %727 = vmatprep.mubr.f32.mxu0 %v122_v15  ;;  %v823_v19 = vpack.c.bf16 %v133_v18, %v132_v17  ;;  %v134_v20 = vld [vmem:[#allocation9 + $0x50] sm:$0xff]  ;;  %v136_v23 = vld [vmem:[#allocation9 + $0x60] sm:$0xff]  ;;  %v137_v24 = vld [vmem:[#allocation9 + $0x68] sm:$0xff]  ;;  %v632_v14 = vmul.f32 -1.442695, %v229_v13  ;;  %p1077_p8 = scmp.lt.s32.totalorder %s1075_s22, %s1071_s21 }
  0x73   :  { %812 = vmatprep.subr.bf16.mxu0 %v811_v8  ;;  %243 = vmax.xlane.f32.xlu0 %v242_v11  ;;  %v827_v22 = vpack.c.bf16 %v135_v21, %v134_v20  ;;  %v831_v25 = vpack.c.bf16 %v137_v24, %v136_v23  ;;  %v138_v26 = vld [vmem:[#allocation9 + $0x70] sm:$0xff]  ;;  %v139_v27 = vld [vmem:[#allocation9 + $0x78] sm:$0xff]  ;;  %v1316_v28 = vld [vmem:[#allocation6] sm:$0xff] }
  0x74   :  { %v835_v29 = vpack.c.bf16 %v139_v27, %v138_v26  ;;  %v295_v30 = vsel %vm238_vm0, %v1316_v28, 0.0  ;;  %v123_v31 = vld [vmem:[#allocation3 + $0x8] sm:$0xff]  ;;  %v312_v32 = vld [vmem:[#allocation11] sm:$0xff]  ;;  %v313_v33 = vld [vmem:[#allocation11 + $0x8] sm:$0xff]  ;;  %p1078_p9 = por %p1077_p8, %p1076_p7 }
  0x75   :  { %296 = vadd.xlane.f32.xlu1 %v295_v30  ;;  %v314_v34 = vld [vmem:[#allocation11 + $0x10] sm:$0xff]  ;;  %v839_v35 = vpack.c.bf16 %v313_v33, %v312_v32  ;;  %v315_v36 = vld [vmem:[#allocation11 + $0x18] sm:$0xff]  ;;  %v316_v38 = vld [vmem:[#allocation11 + $0x20] sm:$0xff] }
  0x76   :  { %814 = vmatpush3.bf16.msra.mxu0 %v811_v8  ;;  %v843_v37 = vpack.c.bf16 %v315_v36, %v314_v34  ;;  %v317_v39 = vld [vmem:[#allocation11 + $0x28] sm:$0xff]  ;;  %v318_v41 = vld [vmem:[#allocation11 + $0x30] sm:$0xff]  ;;  %v319_v42 = vld [vmem:[#allocation11 + $0x38] sm:$0xff]  ;;  %p1079_p10 = pnand %p1078_p9, %p1072_p6 }
  0x77   :  { %816 = vmatprep.subr.bf16.mxu0 %v815_v12  ;;  %840 = vmatprep.subr.bf16.mxu1 %v839_v35  ;;  %v847_v40 = vpack.c.bf16 %v317_v39, %v316_v38  ;;  %v851_v43 = vpack.c.bf16 %v319_v42, %v318_v41  ;;  %v320_v44 = vld [vmem:[#allocation11 + $0x40] sm:$0xff]  ;;  %v321_v45 = vld [vmem:[#allocation11 + $0x48] sm:$0xff]  ;;  %v322_v47 = vld [vmem:[#allocation11 + $0x50] sm:$0xff] }
  0x78   :  { %842 = vmatpush3.bf16.msra.mxu1 %v839_v35  ;;  %v855_v46 = vpack.c.bf16 %v321_v45, %v320_v44  ;;  %v323_v48 = vld [vmem:[#allocation11 + $0x58] sm:$0xff]  ;;  %v324_v50 = vld [vmem:[#allocation11 + $0x60] sm:$0xff]  ;;  %v325_v51 = vld [vmem:[#allocation11 + $0x68] sm:$0xff] }
  0x79   :  { %844 = vmatprep.subr.bf16.mxu1 %v843_v37  ;;  %v859_v49 = vpack.c.bf16 %v323_v48, %v322_v47  ;;  %v863_v52 = vpack.c.bf16 %v325_v51, %v324_v50  ;;  %v326_v53 = vld [vmem:[#allocation11 + $0x70] sm:$0xff]  ;;  %v327_v54 = vld [vmem:[#allocation11 + $0x78] sm:$0xff]  ;;  %v1322_v63 = vld [vmem:[#allocation6 + $0x8] sm:$0xff] }
  0x7a   :  { %818 = vmatpush3.bf16.msra.mxu0 %v815_v12  ;;  %v867_v55 = vpack.c.bf16 %v327_v54, %v326_v53  ;;  %v298_v2 = vsel %vm238_vm0, %v1322_v63, 0.0  ;;  %v498_v47 = vld [vmem:[#allocation12 + $0x8] sm:$0xff]  ;;  %v499_v48 = vld [vmem:[#allocation12 + $0x10] sm:$0xff]  ;;  %v500_v50 = vld [vmem:[#allocation12 + $0x18] sm:$0xff] }
  0x7b   :  { %820 = vmatprep.subr.bf16.mxu0 %v819_v16  ;;  %v879_v51 = vpack.c.bf16 %v500_v50, %v499_v48  ;;  %v502_v53 = vld [vmem:[#allocation12 + $0x28] sm:$0xff] }
  0x7c   :  { %846 = vmatpush3.bf16.msra.mxu1 %v843_v37 }
  0x7d   :  { %848 = vmatprep.subr.bf16.mxu1 %v847_v40 }
  0x7e   :  { %822 = vmatpush3.bf16.msra.mxu0 %v819_v16 }
  0x7f   :  { %824 = vmatprep.subr.bf16.mxu0 %v823_v19 }
  0x80   :  { %850 = vmatpush3.bf16.msra.mxu1 %v847_v40 }
  0x81   :  { %852 = vmatprep.subr.bf16.mxu1 %v851_v43 }
  0x82   :  { %826 = vmatpush3.bf16.msra.mxu0 %v823_v19 }
  0x83   :  { %828 = vmatprep.subr.bf16.mxu0 %v827_v22 }
  0x84   :  { %854 = vmatpush3.bf16.msra.mxu1 %v851_v43 }
  0x85   :  { %856 = vmatprep.subr.bf16.mxu1 %v855_v46 }
  0x86   :  { %830 = vmatpush3.bf16.msra.mxu0 %v827_v22 }
  0x87   :  { %832 = vmatprep.subr.bf16.mxu0 %v831_v25 }
  0x88   :  { %858 = vmatpush3.bf16.msra.mxu1 %v855_v46  ;;  %v497_v46 = vld [vmem:[#allocation12] sm:$0xff] }
  0x89   :  { %860 = vmatprep.subr.bf16.mxu1 %v859_v49 }
  0x8a   :  { %834 = vmatpush3.bf16.msra.mxu0 %v831_v25 }
  0x8b   :  { %836 = vmatprep.subr.bf16.mxu0 %v835_v29 }
  0x8c   :  { %862 = vmatpush3.bf16.msra.mxu1 %v859_v49  ;;  %v875_v49 = vpack.c.bf16 %v498_v47, %v497_v46 }
  0x8d   :  { %864 = vmatprep.subr.bf16.mxu1 %v863_v52 }
  0x8e   :  { %838 = vmatpush3.bf16.msra.mxu0 %v835_v29 }
  0x90   :  { %866 = vmatpush3.bf16.msra.mxu1 %v863_v52  ;;  %v501_v52 = vld [vmem:[#allocation12 + $0x20] sm:$0xff] }
  0x91   :  { %728 = vmatmul.mubr.f32.vlgmr.msra.gmra.mrb[0].mxu0 %v123_v31  ;;  %868 = vmatprep.subr.bf16.mxu1 %v867_v55  ;;  %v883_v54 = vpack.c.bf16 %v502_v53, %v501_v52 }
  0x94   :  { %870 = vmatpush3.bf16.msra.mxu1 %v867_v55  ;;  %v503_v55 = vld [vmem:[#allocation12 + $0x30] sm:$0xff] }
  0x95   :  { %876 = vmatprep.subr.bf16.mxu1 %v875_v49 }
  0xfc   :  { %v241_v56 = vpop.xlane.xlu0 %240 }
  0xfd   :  { %v245_v57 = vsub.f32 %v1308_v0, %v241_v56  ;;  %v631_v0 = vld [vmem:[%s1387_s5] ss:$0 sm:$0xff]  ;;  %v504_v56 = vld [vmem:[#allocation12 + $0x38] sm:$0xff] }
  0xff   :  { %v247_v58 = vmul.f32 1.442695, %v245_v57 }
 0x100   :  { %v244_v59 = vpop.xlane.xlu0 %243 }
 0x101   :  { %919 = vpow2.f32 %v247_v58  ;;  %v246_v60 = vsub.f32 %v1312_v5, %v244_v59  ;;  %v505_v58 = vld [vmem:[#allocation12 + $0x40] sm:$0xff]  ;;  %v506_v59 = vld [vmem:[#allocation12 + $0x48] sm:$0xff] }
 0x102   :  { %v297_v17 = vpop.xlane.xlu1 %296 }
 0x103   :  { %v249_v61 = vmul.f32 1.442695, %v246_v60 }
 0x105   :  { %921 = vpow2.f32 %v249_v61  ;;  %v507_v61 = vld [vmem:[#allocation12 + $0x50] sm:$0xff] }
 0x106   :  { %923 = vpow2.f32 %v632_v14 }
 0x107   :  { %925 = vrcp.f32 %v297_v17  ;;  %v509_v17 = vld [vmem:[#allocation12 + $0x60] sm:$0xff] }
 0x10b   :  { %v920_v62 = vpop.eup %919 }
 0x10c   :  { %v251_v1 = vsel %vm238_vm0, %v920_v62, 0.0 }
 0x10d   :  { %252 = vadd.xlane.f32.xlu1 %v251_v1 }
 0x10f   :  { %v922_v3 = vpop.eup %921 }
 0x110   :  { %v254_v4 = vsel %vm238_vm0, %v922_v3, 0.0  ;;  %v924_v15 = vpop.eup %923 }
 0x111   :  { %299 = vadd.xlane.f32.xlu1 %v298_v2  ;;  %255 = vadd.xlane.f32.xlu0 %v254_v4  ;;  %v233_v16 = vadd.f32 1.0, %v924_v15  ;;  %v926_v19 = vpop.eup %925 }
 0x112   :  { %v304_v23 = vmul.f32 %v926_v19, %v1316_v28 }
 0x113   :  { %927 = vrcp.f32 %v233_v16 }
 0x11d   :  { %v1334_v21 = vpop.eup %927 }
 0x11e   :  { %v303_v22 = vsub.f32 1.0, %v1334_v21 }
 0x120   :  { %v306_v27 = vmul.f32 %v304_v23, %v303_v22  ;;  %v633_v23 = vld [vmem:[%s1389_s7] ss:$0 sm:$0xff] }
 0x164   :  { %v729_v5 = vpop.f32.mrb[0].mxu0 }
 0x165   :  { %v219_v6 = vadd.f32 %v729_v5, %v631_v0  ;;  %v213_v7 = vpop.f32.mrb[1].mxu0 }
 0x166   :  { %v214_v8 = vadd.f32 %v631_v0, %v213_v7 }
 0x167   :  { %v225_v9 = vmul.f32 0.1, %v219_v6  ;;  %vm223_vm2 = vcmp.gt.f32.partialorder %v219_v6, 0.0 }
 0x168   :  { %vm222_vm1 = vcmp.gt.f32.partialorder %v214_v8, 0.0  ;;  %v224_v10 = vmul.f32 0.1, %v214_v8 }
 0x169   :  { %v227_v12 = vsel %vm223_vm2, %v219_v6, %v225_v9 }
 0x16a   :  { %v226_v11 = vsel %vm222_vm1, %v214_v8, %v224_v10 }
 0x16b   :  { %762 = vmatprep.mubr.f32.mxu1 %v226_v11 }
 0x16c   :  { %763 = vmatmul.mubr.f32.vlgmr.msra.gmra.mrb[0].mxu1 %v227_v12 }
 0x16d   :  { %878 = vmatpush3.bf16.msra.mxu1 %v875_v49 }
 0x16e   :  { %880 = vmatprep.subr.bf16.mxu1 %v879_v51 }
 0x171   :  { %882 = vmatpush3.bf16.msra.mxu1 %v879_v51 }
 0x172   :  { %884 = vmatprep.subr.bf16.mxu1 %v883_v54 }
 0x175   :  { %886 = vmatpush3.bf16.msra.mxu1 %v883_v54 }
 0x19a   :  { %v253_v18 = vpop.xlane.xlu1 %252 }
 0x19b   :  { %929 = vrcp.f32 %v253_v18 }
 0x19c   :  { %931 = vlog2.f32 %v253_v18  ;;  %v510_v18 = vld [vmem:[#allocation12 + $0x68] sm:$0xff] }
 0x19d   :  { %v899_v19 = vpack.c.bf16 %v510_v18, %v509_v17 }
 0x19e   :  { %v256_v20 = vpop.xlane.xlu0 %255  ;;  %v300_v2 = vpop.xlane.xlu1 %299 }
 0x19f   :  { %933 = vrcp.f32 %v256_v20 }
 0x1a0   :  { %935 = vlog2.f32 %v256_v20  ;;  %v511_v20 = vld [vmem:[#allocation12 + $0x70] sm:$0xff] }
 0x1a1   :  { %937 = vrcp.f32 %v300_v2 }
 0x1a5   :  { %v930_v24 = vpop.eup %929 }
 0x1a6   :  { %v932_v25 = vpop.eup %931  ;;  %v259_v26 = vmul.f32 %v930_v24, %v920_v62  ;;  %v508_v62 = vld [vmem:[#allocation12 + $0x58] sm:$0xff] }
 0x1a7   :  { %v262_v29 = vmul.f32 0.6931472, %v932_v25  ;;  %v895_v1 = vpack.c.bf16 %v508_v62, %v507_v61 }
 0x1a8   :  { %v308_v30 = vmul.f32 %v1334_v21, %v259_v26  ;;  %v271_v28 = vmul.f32 54.59815, %v259_v26  ;;  %vm267_vm3 = vcmp.gt.f32.partialorder %v259_v26, 0.01831564 }
 0x1a9   :  { %v265_v31 = vsub.f32 %v245_v57, %v262_v29  ;;  %v934_v32 = vpop.eup %933  ;;  %v887_v57 = vpack.c.bf16 %v504_v56, %v503_v55 }
 0x1aa   :  { %v310_v33 = vadd.f32 %v308_v30, %v306_v27  ;;  %v936_v34 = vpop.eup %935  ;;  %v260_v37 = vmul.f32 %v934_v32, %v922_v3 }
 0x1ab   :  { %v269_v35 = vadd.f32 5.0, %v265_v31  ;;  %v264_v36 = vmul.f32 0.6931472, %v936_v34  ;;  %888 = vmatprep.subr.bf16.mxu1 %v887_v57  ;;  %v938_v3 = vpop.eup %937 }
 0x1ac   :  { %769 = vmatprep.mubr.msk.f32.mxu0 %vm238_vm0, %v310_v33  ;;  %v272_v40 = vmul.f32 54.59815, %v260_v37  ;;  %vm268_vm4 = vcmp.gt.f32.partialorder %v260_v37, 0.01831564  ;;  %890 = vmatpush3.bf16.msra.mxu1 %v887_v57  ;;  %v305_v4 = vmul.f32 %v938_v3, %v1322_v63  ;;  %v309_v8 = vmul.f32 %v1334_v21, %v260_v37  ;;  %v512_v21 = vld [vmem:[#allocation12 + $0x78] sm:$0xff] }
 0x1ad   :  { %v266_v38 = vsub.f32 %v246_v60, %v264_v36  ;;  %v273_v41 = vsel %vm267_vm3, %v269_v35, %v271_v28  ;;  %v891_v60 = vpack.c.bf16 %v506_v59, %v505_v58 }
 0x1ae   :  { %v275_v43 = vsel %vm238_vm0, %v273_v41, 0.0  ;;  %v307_v6 = vmul.f32 %v305_v4, %v303_v22  ;;  %v903_v22 = vpack.c.bf16 %v512_v21, %v511_v20 }
 0x1af   :  { %v270_v39 = vadd.f32 5.0, %v266_v38  ;;  %892 = vmatprep.subr.bf16.mxu1 %v891_v60 }
 0x1b0   :  { %894 = vmatpush3.bf16.msra.mxu1 %v891_v60  ;;  %v311_v11 = vadd.f32 %v309_v8, %v307_v6 }
 0x1b1   :  { %v274_v42 = vsel %vm268_vm4, %v270_v39, %v272_v40  ;;  %896 = vmatprep.subr.bf16.mxu1 %v895_v1 }
 0x1b2   :  { %v276_v44 = vsel %vm238_vm0, %v274_v42, 0.0 }
 0x1b3   :  { %v277_v45 = vadd.f32 %v276_v44, %v275_v43 }
 0x1b4   :  { %898 = vmatpush3.bf16.msra.mxu1 %v895_v1 }
 0x1b5   :  { %278 = vadd.xlane.f32.xlu0 %v277_v45  ;;  %900 = vmatprep.subr.bf16.mxu1 %v899_v19 }
 0x1b8   :  { %902 = vmatpush3.bf16.msra.mxu1 %v899_v19 }
 0x1b9   :  { %904 = vmatprep.subr.bf16.mxu1 %v903_v22 }
 0x1bc   :  { %906 = vmatpush3.bf16.msra.mxu1 %v903_v22 }
 0x23f   :  { %v764_v0 = vpop.f32.mrb[0].mxu1 }
 0x240   :  { %v394_v5 = vpop.f32.mrb[1].mxu1 }
 0x241   :  { %v871_v7 = vpack.c.bf16 %v764_v0, %v394_v5 }
 0x242   :  { %v279_v9 = vpop.xlane.xlu0 %278 }
 0x243   :  { %872 = vmatprep.subr.bf16.mxu0 %v871_v7  ;;  %v280_v10 = vrot.slane %v279_v9, 4 }
 0x244   :  { %874 = vmatpush3.bf16.msra.mxu0 %v871_v7 }
 0x245   :  { %v281_v12 = vadd.f32 %v280_v10, %v279_v9 }
 0x247   :  { %770 = vmatmul.mubr.msk.f32.vlgmr.msra.gmra.mrb[2].mxu0 %vm238_vm0, %v311_v11  ;;  %v282_v13 = vrot.slane %v281_v12, 2 }
 0x249   :  { %v283_v14 = vadd.f32 %v282_v13, %v281_v12 }
 0x24b   :  { %v284_v15 = vrot.slane %v283_v14, 1 }
 0x24d   :  { %v285_v63 = vadd.f32 %v284_v15, %v283_v14 }
 0x24f   :  { %907 = vpush %v285_v63 }
 0x280   :  { %s908_s0 = spop %907 }
 0x281   :  { %s289_s5 = smul.f32 0.00390625, %s908_s0 }
 0x283   :  { %v290_v16 = vstv %s289_s5 }
 0x284   :  { %292 = vst.msk [vmem:[#allocation15] sm:$0x1] %vm291_vm5, %v290_v16 }
 0x31a   :  { %v771_v24 = vpop.f32.mrb[2].mxu0 }
 0x31b   :  { %v488_v25 = vadd.f32 %v771_v24, %v633_v23  ;;  %v482_v26 = vpop.f32.mrb[3].mxu0 }
 0x31c   :  { %v483_v27 = vadd.f32 %v633_v23, %v482_v26 }
 0x31d   :  { %v494_v29 = vmul.f32 0.1, %v488_v25  ;;  %vm492_vm6 = vcmp.gt.f32.partialorder %v488_v25, 0.0 }
 0x31e   :  { %v493_v30 = vmul.f32 0.1, %v483_v27  ;;  %vm491_vm7 = vcmp.gt.f32.partialorder %v483_v27, 0.0 }
 0x31f   :  { %v496_v32 = vsel %vm492_vm6, %v488_v25, %v494_v29 }
 0x320   :  { %v495_v31 = vsel %vm491_vm7, %v483_v27, %v493_v30 }
 0x321   :  { %804 = vmatprep.mubr.f32.mxu1 %v495_v31 }
 0x322   :  { %805 = vmatmul.mubr.f32.vlgmr.msra.gmra.mrb[2].mxu1 %v496_v32 }
 0x323   :  { %1082 = shalt.err (!%p1079_p10)
}
 0x324   :  { %s1083_s27 = scalar_lea.hbm %s1393_s11, 16 }
 0x325   :  { %p1084_p11 = scmp.ne.s32.totalorder %s1393_s11, %s1083_s27  ;;  %p1087_p12 = scmp.lt.u32.totalorder %s1083_s27, %s1393_s11 }
 0x327   :  { %p1089_p13 = pnand %p1087_p12, %p1084_p11 }
 0x329   :  { %1092 = shalt.err (!%p1089_p13)
}
 0x32a   :  { %618 = dma.vmem_to_hbm [thread:$0]  %s616_s19, 16, %s1393_s11, [#allocation16]   ;;  %v636_v33 = vld [vmem:[%s1391_s9] ss:$0 sm:$0xff] }
 0x32b   :  { %s1136_s12 = smov [#allocation14]  }
 0x32c   :  { %s602_s6 = sshll.u32 %s1136_s12, 4  ;;  %s603_s6 = int_to_ptr.vmem [resolvable:$true] %s602_s6 }
 0x32d   :  { %s1093_s13 = scalar_lea.vmem %s603_s6, 256  ;;  %p1098_p1 = scmp.lt.s32.totalorder %s603_s6, %s603_s6 }
 0x32e   :  { %p1094_p0 = scmp.ne.s32.totalorder %s603_s6, %s1093_s13  ;;  %p1099_p2 = scmp.lt.s32.totalorder %s1093_s13, %s1093_s13 }
 0x330   :  { %p1100_p3 = por %p1099_p2, %p1098_p1 }
 0x332   :  { %p1101_p4 = pnand %p1100_p3, %p1094_p0 }
 0x3f5   :  { %v806_v34 = vpop.f32.mrb[2].mxu1 }
 0x3f6   :  { %v592_v35 = vadd.f32 %v806_v34, %v636_v33  ;;  %v586_v36 = vpop.f32.mrb[3].mxu1 }
 0x3f7   :  { %v587_v37 = vadd.f32 %v636_v33, %v586_v36 }
 0x3f8   :  { %596 = vst [vmem:[#allocation14 + $0x8] sm:$0xff] %v592_v35 }
 0x3f9   :  { %595 = vst [vmem:[#allocation14] sm:$0xff] %v587_v37 }
 0x3fa   :  { %1104 = shalt.err (!%p1101_p4)
}
 0x3fb   :  { %s1105_s9 = scalar_lea.hbm %s1392_s10, 256 }
 0x3fc   :  { %p1106_p5 = scmp.ne.s32.totalorder %s1392_s10, %s1105_s9  ;;  %p1109_p6 = scmp.lt.u32.totalorder %s1105_s9, %s1392_s10 }
 0x3fe   :  { %p1111_p7 = pnand %p1109_p6, %p1106_p5 }
 0x400   :  { %1114 = shalt.err (!%p1111_p7)
}
 0x401   :  { %608 = dma.vmem_to_hbm [thread:$0]  %s603_s6, 256, %s1392_s10, [#allocation5], %s1129_s29, %s1129_s29, %s1130_s30  }
 0x402   :  { %1123 = dma.done.wait [#allocation5], 256  }
 0x403   :  { %1124 = vsyncadd [#allocation5], 4294967040 }
 0x404   :  { %1125 = dma.done.wait [#allocation16], 16  }
 0x405   :  { %1126 = vsyncadd [#allocation16], 4294967280 }
 0x406   :  { %625 = vsyncpa [#allocation4], 1 }
 0x407   :  { %626 = vsyncpa [#allocation7], 1 }
 0x408   :  { %627 = vsyncpa [#allocation10], 1 }
 0x409   :  { %628 = vsyncpa [#allocation13], 1 }
 0x40a   :  { %629 = vsyncpa [#allocation5], 1 }
 0x40b   :  { %630 = vsyncpa [#allocation16], 1 }

</bundles_post_ra>
